<compile_context>
chip_gen: v5e
topology: v5e:2x2
jax: 0.10.0
libtpu: 0.0.40
codegen_flags: <defaults>
</compile_context>

<pallas_src>
import functools

import jax
import jax.numpy as jnp
from jax import lax
from jax.experimental import pallas as pl
from jax.experimental.pallas import tpu as pltpu


# ----------------------------------------------------------------------------
# Pallas kernels
# ----------------------------------------------------------------------------
def _tcn_block_kernel(x_ref, scale_ref, shift_ref, w_ref, b_ref,
                      y_ref, ssum_ref, ssq_ref, xpad_ref, *,
                      dilation, ksize, padding, lin, lout):
    """Fused (input-BN) + dilated Conv1d + bias + ReLU + partial BN stats.

    One batch element per grid step.
      x_ref:     (1, Lin, Cin)     raw (pre-BN) activation of previous layer
      scale_ref: (1, Cin)          BN scale for the input activation
      shift_ref: (1, Cin)          BN shift for the input activation
      w_ref:     (K, Cin, Cout)    conv weight (torch (Cout,Cin,K) transposed)
      b_ref:     (1, Cout)         conv bias
      y_ref:     (1, Lout, Cout)   raw (pre-BN) output: relu(conv(bn(x)) + b)
      ssum_ref:  (1, 1, Cout)      per-batch-element sum over time
      ssq_ref:   (1, 1, Cout)      per-batch-element sum of squares
      xpad_ref:  (Lin + 2*pad, Cin) VMEM scratch holding the zero-padded input
    """
    cout = y_ref.shape[-1]

    # Apply the previous layer's BatchNorm on the fly (identity for layer 0).
    xb = x_ref[0].astype(jnp.float32) * scale_ref[...] + shift_ref[...]  # (Lin,Cin)

    # Zero-padded copy of the input: realizes the conv's symmetric zero padding.
    # Full-lane store, only a (static) sublane offset.
    xpad_ref[...] = jnp.zeros(xpad_ref.shape, xpad_ref.dtype)
    xpad_ref[padding:padding + lin, :] = xb

    # Dilated conv = K shifted matmuls, accumulated in f32 on the MXU.
    acc = jnp.zeros((lout, cout), jnp.float32)
    for k in range(ksize):                       # static, tiny K
        start = k * dilation                     # static sublane offset
        acc = acc + jnp.dot(xpad_ref[start:start + lout, :],
                            w_ref[k].astype(jnp.float32),
                            preferred_element_type=jnp.float32)

    acc = jnp.maximum(acc + b_ref[...].astype(jnp.float32), 0.0)   # bias + ReLU
    y_ref[0] = acc.astype(y_ref.dtype)

    # Single-pass partial BatchNorm statistics for this batch element.
    ssum_ref[0] = jnp.sum(acc, axis=0, keepdims=True)
    ssq_ref[0] = jnp.sum(acc * acc, axis=0, keepdims=True)


def _head_kernel(x_ref, scale_ref, shift_ref, w_ref, b_ref, o_ref):
    """Apply last block's BN to the last-timestep slice, then the Linear head.

    x_ref: (N, C);  scale/shift: (1, C);  w_ref: (C, Dout);  b_ref: (1, Dout)
    """
    xb = x_ref[...].astype(jnp.float32) * scale_ref[...] + shift_ref[...]
    out = jnp.dot(xb, w_ref[...].astype(jnp.float32),
                  preferred_element_type=jnp.float32)
    o_ref[...] = (out + b_ref[...].astype(jnp.float32)).astype(o_ref.dtype)


# ----------------------------------------------------------------------------
# Wrappers (pallas_call plumbing + tiny per-channel BN finalize glue)
# ----------------------------------------------------------------------------
def tcn_block(x, in_scale, in_shift, w3d, b, *, dilation, ksize):
    """x: (N, Lin, Cin) raw activation; returns (y_raw, ssum, ssq)."""
    N, Lin, Cin = x.shape
    K, Cin_w, Cout = w3d.shape
    assert K == ksize and Cin_w == Cin
    padding = (ksize - 1) * dilation
    Lout = Lin + 2 * padding - dilation * (ksize - 1)   # == Lin + padding
    Lpad = Lin + 2 * padding

    kernel = functools.partial(_tcn_block_kernel, dilation=dilation,
                               ksize=ksize, padding=padding, lin=Lin, lout=Lout)

    flops = 2 * N * Lout * (ksize * Cin) * Cout
    bytes_accessed = 4 * (N * Lin * Cin + N * Lout * Cout
                          + ksize * Cin * Cout + 2 * N * Cout + 2 * Cin + Cout)

    grid_spec = pltpu.PrefetchScalarGridSpec(
        num_scalar_prefetch=0,
        grid=(N,),
        in_specs=[
            pl.BlockSpec((1, Lin, Cin), lambda i: (i, 0, 0)),
            pl.BlockSpec((1, Cin), lambda i: (0, 0)),
            pl.BlockSpec((1, Cin), lambda i: (0, 0)),
            pl.BlockSpec((K, Cin, Cout), lambda i: (0, 0, 0)),
            pl.BlockSpec((1, Cout), lambda i: (0, 0)),
        ],
        out_specs=[
            pl.BlockSpec((1, Lout, Cout), lambda i: (i, 0, 0)),
            pl.BlockSpec((1, 1, Cout), lambda i: (i, 0, 0)),
            pl.BlockSpec((1, 1, Cout), lambda i: (i, 0, 0)),
        ],
        scratch_shapes=[pltpu.VMEM((Lpad, Cin), jnp.float32)],
    )

    y, ssum, ssq = pl.pallas_call(
        kernel,
        out_shape=(
            jax.ShapeDtypeStruct((N, Lout, Cout), x.dtype),
            jax.ShapeDtypeStruct((N, 1, Cout), jnp.float32),
            jax.ShapeDtypeStruct((N, 1, Cout), jnp.float32),
        ),
        grid_spec=grid_spec,
        compiler_params=pltpu.CompilerParams(
            dimension_semantics=("parallel",),
            vmem_limit_bytes=64 * 1024 * 1024,
        ),
        cost_estimate=pl.CostEstimate(
            flops=flops, transcendentals=0, bytes_accessed=bytes_accessed),
    )(x, in_scale, in_shift, w3d, b)
    return y, ssum, ssq


def _bn_scale_shift(ssum, ssq, gamma, beta, count, eps=1e-5):
    """Per-channel finalize of training-mode BatchNorm (biased variance)."""
    mean = ssum / count
    var = jnp.maximum(ssq / count - mean * mean, 0.0)
    scale = gamma * lax.rsqrt(var + eps)
    shift = beta - mean * scale
    return scale.reshape(1, -1), shift.reshape(1, -1)


def head(x_last, scale, shift, lw, lb):
    """x_last: (N, C) last-timestep slice; lw: (C, Dout)."""
    N, _ = x_last.shape
    Dout = lw.shape[1]
    return pl.pallas_call(
        _head_kernel,
        out_shape=jax.ShapeDtypeStruct((N, Dout), x_last.dtype),
    )(x_last, scale, shift, lw, lb.reshape(1, Dout))


def temporal_conv_net(x, params, *, kernel_size):
    """x: (N, L, input_dim) — same input the PyTorch forward receives."""
    N = x.shape[0]
    # Identity "input BN" for the first block.
    scale = jnp.ones((1, x.shape[-1]), jnp.float32)
    shift = jnp.zeros((1, x.shape[-1]), jnp.float32)

    y = x
    for i, p in enumerate(params["blocks"]):
        dilation = 2 ** i
        y, ssum, ssq = tcn_block(y, scale, shift, p["w3d"], p["b"],
                                 dilation=dilation, ksize=kernel_size)
        # Tiny per-channel glue: reduce partial stats over batch, finalize BN.
        count = float(N * y.shape[1])
        ssum_t = jnp.sum(ssum[:, 0, :], axis=0)
        ssq_t = jnp.sum(ssq[:, 0, :], axis=0)
        scale, shift = _bn_scale_shift(ssum_t, ssq_t, p["gamma"], p["beta"], count)

    # Only the last timestep feeds the head — slice it, don't move (N,L,C).
    x_last = y[:, -1, :]
    return head(x_last, scale, shift, params["lin_w"], params["lin_b"])


# ----------------------------------------------------------------------------
# Deterministic parameter initialization (mirrors the torch module layout)
# ----------------------------------------------------------------------------
def init_params(key, input_dim, output_dim, num_channels, kernel_size):
    params = {"blocks": []}
    in_ch = input_dim
    for out_ch in num_channels:
        key, k1, k2 = jax.random.split(key, 3)
        bound = 1.0 / (in_ch * kernel_size) ** 0.5
        # torch Conv1d weight is (Cout, Cin, K); re-lay-out to (K, Cin, Cout).
        w = jax.random.uniform(k1, (out_ch, in_ch, kernel_size), jnp.float32,
                               -bound, bound)
        b = jax.random.uniform(k2, (out_ch,), jnp.float32, -bound, bound)
        params["blocks"].append({
            "w3d": jnp.transpose(w, (2, 1, 0)),      # (K, Cin, Cout)
            "b": b.reshape(1, out_ch),
            "gamma": jnp.ones((out_ch,), jnp.float32),   # torch BN default
            "beta": jnp.zeros((out_ch,), jnp.float32),   # torch BN default
        })
        in_ch = out_ch
    key, k1, k2 = jax.random.split(key, 3)
    bound = 1.0 / in_ch ** 0.5
    lw = jax.random.uniform(k1, (output_dim, in_ch), jnp.float32, -bound, bound)
    lb = jax.random.uniform(k2, (output_dim,), jnp.float32, -bound, bound)
    params["lin_w"] = lw.T                      # (C_last, output_dim)
    params["lin_b"] = lb
    return params


# ----------------------------------------------------------------------------
if __name__ == "__main__":
    key = jax.random.PRNGKey(0)

    batch, seq_len = 2, 16
    input_dim, output_dim = 4, 5
    num_channels = (8, 16)
    kernel_size = 3

    key, kx, kp = jax.random.split(key, 3)
    x = jax.random.normal(kx, (batch, seq_len, input_dim), jnp.float32)
    params = init_params(kp, input_dim, output_dim, num_channels, kernel_size)

    fwd = jax.jit(functools.partial(temporal_conv_net, kernel_size=kernel_size))
    out = fwd(x, params)
    out = jax.block_until_ready(out)
    assert out.shape == (batch, output_dim), out.shape
    assert bool(jnp.all(jnp.isfinite(out)))
    print("KERNEL_OK")
</pallas_src>

<mosaic_0001>
module attributes {stable_mosaic.version = 11 : i64} {
  func.func @_tcn_block_kernel(%arg0: i32, %arg1: memref<1x16x4xf32, #tpu.memory_space<vmem>>, %arg2: memref<1x4xf32, #tpu.memory_space<vmem>>, %arg3: memref<1x4xf32, #tpu.memory_space<vmem>>, %arg4: memref<3x4x8xf32, #tpu.memory_space<vmem>>, %arg5: memref<1x8xf32, #tpu.memory_space<vmem>>, %arg6: memref<1x18x8xf32, #tpu.memory_space<vmem>>, %arg7: memref<1x1x8xf32, #tpu.memory_space<vmem>>, %arg8: memref<1x1x8xf32, #tpu.memory_space<vmem>>, %arg9: memref<20x4xf32, #tpu.memory_space<vmem>>) attributes {dimension_semantics = [#tpu.dimension_semantics<parallel>], iteration_bounds = array<i64: 2>, scalar_prefetch = 0 : i64, scratch_operands = 1 : i64, tpu.core_type = #tpu.core_type<tc>, window_params = [{transform_indices = @transform_0, window_bounds = array<i64: 1, 16, 4>}, {pipeline_mode = #tpu.pipeline_mode<synchronous>, transform_indices = @transform_1, window_bounds = array<i64: 1, 4>}, {pipeline_mode = #tpu.pipeline_mode<synchronous>, transform_indices = @transform_2, window_bounds = array<i64: 1, 4>}, {pipeline_mode = #tpu.pipeline_mode<synchronous>, transform_indices = @transform_3, window_bounds = array<i64: 3, 4, 8>}, {pipeline_mode = #tpu.pipeline_mode<synchronous>, transform_indices = @transform_4, window_bounds = array<i64: 1, 8>}, {transform_indices = @transform_5, window_bounds = array<i64: 1, 18, 8>}, {transform_indices = @transform_6, window_bounds = array<i64: 1, 1, 8>}, {transform_indices = @transform_7, window_bounds = array<i64: 1, 1, 8>}]} {
    %c0 = arith.constant 0 : index
    %c0_0 = arith.constant 0 : index
    %c0_1 = arith.constant 0 : index
    %0 = vector.load %arg1[%c0, %c0_0, %c0_1] : memref<1x16x4xf32, #tpu.memory_space<vmem>>, vector<1x16x4xf32>
    %1 = vector.shape_cast %0 : vector<1x16x4xf32> to vector<16x4xf32>
    %c0_2 = arith.constant 0 : index
    %c0_3 = arith.constant 0 : index
    %2 = vector.load %arg2[%c0_2, %c0_3] : memref<1x4xf32, #tpu.memory_space<vmem>>, vector<1x4xf32>
    %3 = vector.broadcast %2 : vector<1x4xf32> to vector<16x4xf32>
    %4 = arith.mulf %1, %3 : vector<16x4xf32>
    %c0_4 = arith.constant 0 : index
    %c0_5 = arith.constant 0 : index
    %5 = vector.load %arg3[%c0_4, %c0_5] : memref<1x4xf32, #tpu.memory_space<vmem>>, vector<1x4xf32>
    %6 = vector.broadcast %5 : vector<1x4xf32> to vector<16x4xf32>
    %7 = arith.addf %4, %6 : vector<16x4xf32>
    %cst = arith.constant 0.000000e+00 : f32
    %8 = vector.broadcast %cst : f32 to vector<20x4xf32>
    %c0_6 = arith.constant 0 : index
    %c0_7 = arith.constant 0 : index
    %9 = vector.load %arg9[%c0_6, %c0_7] : memref<20x4xf32, #tpu.memory_space<vmem>>, vector<20x4xf32>
    tpu.vector_store %arg9[%c0_6, %c0_7], %8 {strides = array<i32>} : memref<20x4xf32, #tpu.memory_space<vmem>>, vector<20x4xf32>,
    %c2 = arith.constant 2 : index
    %c0_8 = arith.constant 0 : index
    %10 = vector.load %arg9[%c2, %c0_8] : memref<20x4xf32, #tpu.memory_space<vmem>>, vector<16x4xf32>
    tpu.vector_store %arg9[%c2, %c0_8], %7 {strides = array<i32>} : memref<20x4xf32, #tpu.memory_space<vmem>>, vector<16x4xf32>,
    %cst_9 = arith.constant 0.000000e+00 : f32
    %11 = vector.broadcast %cst_9 : f32 to vector<18x8xf32>
    %c0_10 = arith.constant 0 : index
    %c0_11 = arith.constant 0 : index
    %12 = vector.load %arg9[%c0_10, %c0_11] : memref<20x4xf32, #tpu.memory_space<vmem>>, vector<18x4xf32>
    %c0_12 = arith.constant 0 : index
    %c0_13 = arith.constant 0 : index
    %c0_14 = arith.constant 0 : index
    %13 = vector.load %arg4[%c0_12, %c0_13, %c0_14] : memref<3x4x8xf32, #tpu.memory_space<vmem>>, vector<1x4x8xf32>
    %14 = vector.shape_cast %13 : vector<1x4x8xf32> to vector<4x8xf32>
    %cst_15 = arith.constant dense<0.000000e+00> : vector<18x8xf32>
    %15 = tpu.matmul %12, %14, %cst_15 {dimension_numbers = #tpu.dot_dimension_numbers<[1], [0], [0], [1], [0, 0, 1, 1], [], []>} : vector<18x4xf32>, vector<4x8xf32>, vector<18x8xf32> -> vector<18x8xf32>
    %16 = arith.addf %11, %15 : vector<18x8xf32>
    %c1 = arith.constant 1 : index
    %c0_16 = arith.constant 0 : index
    %17 = vector.load %arg9[%c1, %c0_16] : memref<20x4xf32, #tpu.memory_space<vmem>>, vector<18x4xf32>
    %c1_17 = arith.constant 1 : index
    %c0_18 = arith.constant 0 : index
    %c0_19 = arith.constant 0 : index
    %18 = vector.load %arg4[%c1_17, %c0_18, %c0_19] : memref<3x4x8xf32, #tpu.memory_space<vmem>>, vector<1x4x8xf32>
    %19 = vector.shape_cast %18 : vector<1x4x8xf32> to vector<4x8xf32>
    %cst_20 = arith.constant dense<0.000000e+00> : vector<18x8xf32>
    %20 = tpu.matmul %17, %19, %cst_20 {dimension_numbers = #tpu.dot_dimension_numbers<[1], [0], [0], [1], [0, 0, 1, 1], [], []>} : vector<18x4xf32>, vector<4x8xf32>, vector<18x8xf32> -> vector<18x8xf32>
    %21 = arith.addf %16, %20 : vector<18x8xf32>
    %c2_21 = arith.constant 2 : index
    %c0_22 = arith.constant 0 : index
    %22 = vector.load %arg9[%c2_21, %c0_22] : memref<20x4xf32, #tpu.memory_space<vmem>>, vector<18x4xf32>
    %c2_23 = arith.constant 2 : index
    %c0_24 = arith.constant 0 : index
    %c0_25 = arith.constant 0 : index
    %23 = vector.load %arg4[%c2_23, %c0_24, %c0_25] : memref<3x4x8xf32, #tpu.memory_space<vmem>>, vector<1x4x8xf32>
    %24 = vector.shape_cast %23 : vector<1x4x8xf32> to vector<4x8xf32>
    %cst_26 = arith.constant dense<0.000000e+00> : vector<18x8xf32>
    %25 = tpu.matmul %22, %24, %cst_26 {dimension_numbers = #tpu.dot_dimension_numbers<[1], [0], [0], [1], [0, 0, 1, 1], [], []>} : vector<18x4xf32>, vector<4x8xf32>, vector<18x8xf32> -> vector<18x8xf32>
    %26 = arith.addf %21, %25 : vector<18x8xf32>
    %c0_27 = arith.constant 0 : index
    %c0_28 = arith.constant 0 : index
    %27 = vector.load %arg5[%c0_27, %c0_28] : memref<1x8xf32, #tpu.memory_space<vmem>>, vector<1x8xf32>
    %28 = vector.broadcast %27 : vector<1x8xf32> to vector<18x8xf32>
    %29 = arith.addf %26, %28 : vector<18x8xf32>
    %cst_29 = arith.constant 0.000000e+00 : f32
    %30 = vector.broadcast %cst_29 : f32 to vector<18x8xf32>
    %31 = arith.maximumf %29, %30 : vector<18x8xf32>
    %c0_30 = arith.constant 0 : index
    %c0_31 = arith.constant 0 : index
    %c0_32 = arith.constant 0 : index
    %32 = vector.load %arg6[%c0_30, %c0_31, %c0_32] : memref<1x18x8xf32, #tpu.memory_space<vmem>>, vector<1x18x8xf32>
    %33 = vector.shape_cast %32 : vector<1x18x8xf32> to vector<18x8xf32>
    %34 = vector.shape_cast %31 : vector<18x8xf32> to vector<1x18x8xf32>
    tpu.vector_store %arg6[%c0_30, %c0_31, %c0_32], %34 {strides = array<i32>} : memref<1x18x8xf32, #tpu.memory_space<vmem>>, vector<1x18x8xf32>,
    %cst_33 = arith.constant dense<0.000000e+00> : vector<8xf32>
    %35 = vector.multi_reduction <add>, %31, %cst_33 [0] : vector<18x8xf32> to vector<8xf32>
    %36 = vector.shape_cast %35 : vector<8xf32> to vector<1x8xf32>
    %c0_34 = arith.constant 0 : index
    %c0_35 = arith.constant 0 : index
    %c0_36 = arith.constant 0 : index
    %37 = vector.load %arg7[%c0_34, %c0_35, %c0_36] : memref<1x1x8xf32, #tpu.memory_space<vmem>>, vector<1x1x8xf32>
    %38 = vector.shape_cast %37 : vector<1x1x8xf32> to vector<1x8xf32>
    %39 = vector.shape_cast %36 : vector<1x8xf32> to vector<1x1x8xf32>
    tpu.vector_store %arg7[%c0_34, %c0_35, %c0_36], %39 {strides = array<i32>} : memref<1x1x8xf32, #tpu.memory_space<vmem>>, vector<1x1x8xf32>,
    %40 = arith.mulf %31, %31 : vector<18x8xf32>
    %cst_37 = arith.constant dense<0.000000e+00> : vector<8xf32>
    %41 = vector.multi_reduction <add>, %40, %cst_37 [0] : vector<18x8xf32> to vector<8xf32>
    %42 = vector.shape_cast %41 : vector<8xf32> to vector<1x8xf32>
    %c0_38 = arith.constant 0 : index
    %c0_39 = arith.constant 0 : index
    %c0_40 = arith.constant 0 : index
    %43 = vector.load %arg8[%c0_38, %c0_39, %c0_40] : memref<1x1x8xf32, #tpu.memory_space<vmem>>, vector<1x1x8xf32>
    %44 = vector.shape_cast %43 : vector<1x1x8xf32> to vector<1x8xf32>
    %45 = vector.shape_cast %42 : vector<1x8xf32> to vector<1x1x8xf32>
    tpu.vector_store %arg8[%c0_38, %c0_39, %c0_40], %45 {strides = array<i32>} : memref<1x1x8xf32, #tpu.memory_space<vmem>>, vector<1x1x8xf32>,
    return
  }
  func.func @transform_0(%arg0: i32) -> (i32, i32, i32) {
    %c0_i32 = arith.constant 0 : i32
    %c0_i32_0 = arith.constant 0 : i32
    %c0_i32_1 = arith.constant 0 : i32
    return %arg0, %c0_i32, %c0_i32_0 : i32, i32, i32
  }
  func.func @transform_1(%arg0: i32) -> (i32, i32) {
    %c0_i32 = arith.constant 0 : i32
    %c0_i32_0 = arith.constant 0 : i32
    %c0_i32_1 = arith.constant 0 : i32
    return %c0_i32, %c0_i32_0 : i32, i32
  }
  func.func @transform_2(%arg0: i32) -> (i32, i32) {
    %c0_i32 = arith.constant 0 : i32
    %c0_i32_0 = arith.constant 0 : i32
    %c0_i32_1 = arith.constant 0 : i32
    return %c0_i32, %c0_i32_0 : i32, i32
  }
  func.func @transform_3(%arg0: i32) -> (i32, i32, i32) {
    %c0_i32 = arith.constant 0 : i32
    %c0_i32_0 = arith.constant 0 : i32
    %c0_i32_1 = arith.constant 0 : i32
    %c0_i32_2 = arith.constant 0 : i32
    return %c0_i32, %c0_i32_0, %c0_i32_1 : i32, i32, i32
  }
  func.func @transform_4(%arg0: i32) -> (i32, i32) {
    %c0_i32 = arith.constant 0 : i32
    %c0_i32_0 = arith.constant 0 : i32
    %c0_i32_1 = arith.constant 0 : i32
    return %c0_i32, %c0_i32_0 : i32, i32
  }
  func.func @transform_5(%arg0: i32) -> (i32, i32, i32) {
    %c0_i32 = arith.constant 0 : i32
    %c0_i32_0 = arith.constant 0 : i32
    %c0_i32_1 = arith.constant 0 : i32
    return %arg0, %c0_i32, %c0_i32_0 : i32, i32, i32
  }
  func.func @transform_6(%arg0: i32) -> (i32, i32, i32) {
    %c0_i32 = arith.constant 0 : i32
    %c0_i32_0 = arith.constant 0 : i32
    %c0_i32_1 = arith.constant 0 : i32
    return %arg0, %c0_i32, %c0_i32_0 : i32, i32, i32
  }
  func.func @transform_7(%arg0: i32) -> (i32, i32, i32) {
    %c0_i32 = arith.constant 0 : i32
    %c0_i32_0 = arith.constant 0 : i32
    %c0_i32_1 = arith.constant 0 : i32
    return %arg0, %c0_i32, %c0_i32_0 : i32, i32, i32
  }
}

module attributes {stable_mosaic.version = 11 : i64} {
  func.func @_tcn_block_kernel(%arg0: i32, %arg1: memref<1x18x8xf32, #tpu.memory_space<vmem>>, %arg2: memref<1x8xf32, #tpu.memory_space<vmem>>, %arg3: memref<1x8xf32, #tpu.memory_space<vmem>>, %arg4: memref<3x8x16xf32, #tpu.memory_space<vmem>>, %arg5: memref<1x16xf32, #tpu.memory_space<vmem>>, %arg6: memref<1x22x16xf32, #tpu.memory_space<vmem>>, %arg7: memref<1x1x16xf32, #tpu.memory_space<vmem>>, %arg8: memref<1x1x16xf32, #tpu.memory_space<vmem>>, %arg9: memref<26x8xf32, #tpu.memory_space<vmem>>) attributes {dimension_semantics = [#tpu.dimension_semantics<parallel>], iteration_bounds = array<i64: 2>, scalar_prefetch = 0 : i64, scratch_operands = 1 : i64, tpu.core_type = #tpu.core_type<tc>, window_params = [{transform_indices = @transform_0, window_bounds = array<i64: 1, 18, 8>}, {pipeline_mode = #tpu.pipeline_mode<synchronous>, transform_indices = @transform_1, window_bounds = array<i64: 1, 8>}, {pipeline_mode = #tpu.pipeline_mode<synchronous>, transform_indices = @transform_2, window_bounds = array<i64: 1, 8>}, {pipeline_mode = #tpu.pipeline_mode<synchronous>, transform_indices = @transform_3, window_bounds = array<i64: 3, 8, 16>}, {pipeline_mode = #tpu.pipeline_mode<synchronous>, transform_indices = @transform_4, window_bounds = array<i64: 1, 16>}, {transform_indices = @transform_5, window_bounds = array<i64: 1, 22, 16>}, {transform_indices = @transform_6, window_bounds = array<i64: 1, 1, 16>}, {transform_indices = @transform_7, window_bounds = array<i64: 1, 1, 16>}]} {
    %c0 = arith.constant 0 : index
    %c0_0 = arith.constant 0 : index
    %c0_1 = arith.constant 0 : index
    %0 = vector.load %arg1[%c0, %c0_0, %c0_1] : memref<1x18x8xf32, #tpu.memory_space<vmem>>, vector<1x18x8xf32>
    %1 = vector.shape_cast %0 : vector<1x18x8xf32> to vector<18x8xf32>
    %c0_2 = arith.constant 0 : index
    %c0_3 = arith.constant 0 : index
    %2 = vector.load %arg2[%c0_2, %c0_3] : memref<1x8xf32, #tpu.memory_space<vmem>>, vector<1x8xf32>
    %3 = vector.broadcast %2 : vector<1x8xf32> to vector<18x8xf32>
    %4 = arith.mulf %1, %3 : vector<18x8xf32>
    %c0_4 = arith.constant 0 : index
    %c0_5 = arith.constant 0 : index
    %5 = vector.load %arg3[%c0_4, %c0_5] : memref<1x8xf32, #tpu.memory_space<vmem>>, vector<1x8xf32>
    %6 = vector.broadcast %5 : vector<1x8xf32> to vector<18x8xf32>
    %7 = arith.addf %4, %6 : vector<18x8xf32>
    %cst = arith.constant 0.000000e+00 : f32
    %8 = vector.broadcast %cst : f32 to vector<26x8xf32>
    %c0_6 = arith.constant 0 : index
    %c0_7 = arith.constant 0 : index
    %9 = vector.load %arg9[%c0_6, %c0_7] : memref<26x8xf32, #tpu.memory_space<vmem>>, vector<26x8xf32>
    tpu.vector_store %arg9[%c0_6, %c0_7], %8 {strides = array<i32>} : memref<26x8xf32, #tpu.memory_space<vmem>>, vector<26x8xf32>,
    %c4 = arith.constant 4 : index
    %c0_8 = arith.constant 0 : index
    %10 = vector.load %arg9[%c4, %c0_8] : memref<26x8xf32, #tpu.memory_space<vmem>>, vector<18x8xf32>
    tpu.vector_store %arg9[%c4, %c0_8], %7 {strides = array<i32>} : memref<26x8xf32, #tpu.memory_space<vmem>>, vector<18x8xf32>,
    %cst_9 = arith.constant 0.000000e+00 : f32
    %11 = vector.broadcast %cst_9 : f32 to vector<22x16xf32>
    %c0_10 = arith.constant 0 : index
    %c0_11 = arith.constant 0 : index
    %12 = vector.load %arg9[%c0_10, %c0_11] : memref<26x8xf32, #tpu.memory_space<vmem>>, vector<22x8xf32>
    %c0_12 = arith.constant 0 : index
    %c0_13 = arith.constant 0 : index
    %c0_14 = arith.constant 0 : index
    %13 = vector.load %arg4[%c0_12, %c0_13, %c0_14] : memref<3x8x16xf32, #tpu.memory_space<vmem>>, vector<1x8x16xf32>
    %14 = vector.shape_cast %13 : vector<1x8x16xf32> to vector<8x16xf32>
    %cst_15 = arith.constant dense<0.000000e+00> : vector<22x16xf32>
    %15 = tpu.matmul %12, %14, %cst_15 {dimension_numbers = #tpu.dot_dimension_numbers<[1], [0], [0], [1], [0, 0, 1, 1], [], []>} : vector<22x8xf32>, vector<8x16xf32>, vector<22x16xf32> -> vector<22x16xf32>
    %16 = arith.addf %11, %15 : vector<22x16xf32>
    %c2 = arith.constant 2 : index
    %c0_16 = arith.constant 0 : index
    %17 = vector.load %arg9[%c2, %c0_16] : memref<26x8xf32, #tpu.memory_space<vmem>>, vector<22x8xf32>
    %c1 = arith.constant 1 : index
    %c0_17 = arith.constant 0 : index
    %c0_18 = arith.constant 0 : index
    %18 = vector.load %arg4[%c1, %c0_17, %c0_18] : memref<3x8x16xf32, #tpu.memory_space<vmem>>, vector<1x8x16xf32>
    %19 = vector.shape_cast %18 : vector<1x8x16xf32> to vector<8x16xf32>
    %cst_19 = arith.constant dense<0.000000e+00> : vector<22x16xf32>
    %20 = tpu.matmul %17, %19, %cst_19 {dimension_numbers = #tpu.dot_dimension_numbers<[1], [0], [0], [1], [0, 0, 1, 1], [], []>} : vector<22x8xf32>, vector<8x16xf32>, vector<22x16xf32> -> vector<22x16xf32>
    %21 = arith.addf %16, %20 : vector<22x16xf32>
    %c4_20 = arith.constant 4 : index
    %c0_21 = arith.constant 0 : index
    %22 = vector.load %arg9[%c4_20, %c0_21] : memref<26x8xf32, #tpu.memory_space<vmem>>, vector<22x8xf32>
    %c2_22 = arith.constant 2 : index
    %c0_23 = arith.constant 0 : index
    %c0_24 = arith.constant 0 : index
    %23 = vector.load %arg4[%c2_22, %c0_23, %c0_24] : memref<3x8x16xf32, #tpu.memory_space<vmem>>, vector<1x8x16xf32>
    %24 = vector.shape_cast %23 : vector<1x8x16xf32> to vector<8x16xf32>
    %cst_25 = arith.constant dense<0.000000e+00> : vector<22x16xf32>
    %25 = tpu.matmul %22, %24, %cst_25 {dimension_numbers = #tpu.dot_dimension_numbers<[1], [0], [0], [1], [0, 0, 1, 1], [], []>} : vector<22x8xf32>, vector<8x16xf32>, vector<22x16xf32> -> vector<22x16xf32>
    %26 = arith.addf %21, %25 : vector<22x16xf32>
    %c0_26 = arith.constant 0 : index
    %c0_27 = arith.constant 0 : index
    %27 = vector.load %arg5[%c0_26, %c0_27] : memref<1x16xf32, #tpu.memory_space<vmem>>, vector<1x16xf32>
    %28 = vector.broadcast %27 : vector<1x16xf32> to vector<22x16xf32>
    %29 = arith.addf %26, %28 : vector<22x16xf32>
    %cst_28 = arith.constant 0.000000e+00 : f32
    %30 = vector.broadcast %cst_28 : f32 to vector<22x16xf32>
    %31 = arith.maximumf %29, %30 : vector<22x16xf32>
    %c0_29 = arith.constant 0 : index
    %c0_30 = arith.constant 0 : index
    %c0_31 = arith.constant 0 : index
    %32 = vector.load %arg6[%c0_29, %c0_30, %c0_31] : memref<1x22x16xf32, #tpu.memory_space<vmem>>, vector<1x22x16xf32>
    %33 = vector.shape_cast %32 : vector<1x22x16xf32> to vector<22x16xf32>
    %34 = vector.shape_cast %31 : vector<22x16xf32> to vector<1x22x16xf32>
    tpu.vector_store %arg6[%c0_29, %c0_30, %c0_31], %34 {strides = array<i32>} : memref<1x22x16xf32, #tpu.memory_space<vmem>>, vector<1x22x16xf32>,
    %cst_32 = arith.constant dense<0.000000e+00> : vector<16xf32>
    %35 = vector.multi_reduction <add>, %31, %cst_32 [0] : vector<22x16xf32> to vector<16xf32>
    %36 = vector.shape_cast %35 : vector<16xf32> to vector<1x16xf32>
    %c0_33 = arith.constant 0 : index
    %c0_34 = arith.constant 0 : index
    %c0_35 = arith.constant 0 : index
    %37 = vector.load %arg7[%c0_33, %c0_34, %c0_35] : memref<1x1x16xf32, #tpu.memory_space<vmem>>, vector<1x1x16xf32>
    %38 = vector.shape_cast %37 : vector<1x1x16xf32> to vector<1x16xf32>
    %39 = vector.shape_cast %36 : vector<1x16xf32> to vector<1x1x16xf32>
    tpu.vector_store %arg7[%c0_33, %c0_34, %c0_35], %39 {strides = array<i32>} : memref<1x1x16xf32, #tpu.memory_space<vmem>>, vector<1x1x16xf32>,
    %40 = arith.mulf %31, %31 : vector<22x16xf32>
    %cst_36 = arith.constant dense<0.000000e+00> : vector<16xf32>
    %41 = vector.multi_reduction <add>, %40, %cst_36 [0] : vector<22x16xf32> to vector<16xf32>
    %42 = vector.shape_cast %41 : vector<16xf32> to vector<1x16xf32>
    %c0_37 = arith.constant 0 : index
    %c0_38 = arith.constant 0 : index
    %c0_39 = arith.constant 0 : index
    %43 = vector.load %arg8[%c0_37, %c0_38, %c0_39] : memref<1x1x16xf32, #tpu.memory_space<vmem>>, vector<1x1x16xf32>
    %44 = vector.shape_cast %43 : vector<1x1x16xf32> to vector<1x16xf32>
    %45 = vector.shape_cast %42 : vector<1x16xf32> to vector<1x1x16xf32>
    tpu.vector_store %arg8[%c0_37, %c0_38, %c0_39], %45 {strides = array<i32>} : memref<1x1x16xf32, #tpu.memory_space<vmem>>, vector<1x1x16xf32>,
    return
  }
  func.func @transform_0(%arg0: i32) -> (i32, i32, i32) {
    %c0_i32 = arith.constant 0 : i32
    %c0_i32_0 = arith.constant 0 : i32
    %c0_i32_1 = arith.constant 0 : i32
    return %arg0, %c0_i32, %c0_i32_0 : i32, i32, i32
  }
  func.func @transform_1(%arg0: i32) -> (i32, i32) {
    %c0_i32 = arith.constant 0 : i32
    %c0_i32_0 = arith.constant 0 : i32
    %c0_i32_1 = arith.constant 0 : i32
    return %c0_i32, %c0_i32_0 : i32, i32
  }
  func.func @transform_2(%arg0: i32) -> (i32, i32) {
    %c0_i32 = arith.constant 0 : i32
    %c0_i32_0 = arith.constant 0 : i32
    %c0_i32_1 = arith.constant 0 : i32
    return %c0_i32, %c0_i32_0 : i32, i32
  }
  func.func @transform_3(%arg0: i32) -> (i32, i32, i32) {
    %c0_i32 = arith.constant 0 : i32
    %c0_i32_0 = arith.constant 0 : i32
    %c0_i32_1 = arith.constant 0 : i32
    %c0_i32_2 = arith.constant 0 : i32
    return %c0_i32, %c0_i32_0, %c0_i32_1 : i32, i32, i32
  }
  func.func @transform_4(%arg0: i32) -> (i32, i32) {
    %c0_i32 = arith.constant 0 : i32
    %c0_i32_0 = arith.constant 0 : i32
    %c0_i32_1 = arith.constant 0 : i32
    return %c0_i32, %c0_i32_0 : i32, i32
  }
  func.func @transform_5(%arg0: i32) -> (i32, i32, i32) {
    %c0_i32 = arith.constant 0 : i32
    %c0_i32_0 = arith.constant 0 : i32
    %c0_i32_1 = arith.constant 0 : i32
    return %arg0, %c0_i32, %c0_i32_0 : i32, i32, i32
  }
  func.func @transform_6(%arg0: i32) -> (i32, i32, i32) {
    %c0_i32 = arith.constant 0 : i32
    %c0_i32_0 = arith.constant 0 : i32
    %c0_i32_1 = arith.constant 0 : i32
    return %arg0, %c0_i32, %c0_i32_0 : i32, i32, i32
  }
  func.func @transform_7(%arg0: i32) -> (i32, i32, i32) {
    %c0_i32 = arith.constant 0 : i32
    %c0_i32_0 = arith.constant 0 : i32
    %c0_i32_1 = arith.constant 0 : i32
    return %arg0, %c0_i32, %c0_i32_0 : i32, i32, i32
  }
}

module attributes {stable_mosaic.version = 11 : i64} {
  func.func @_head_kernel(%arg0: memref<2x16xf32, #tpu.memory_space<vmem>>, %arg1: memref<1x16xf32, #tpu.memory_space<vmem>>, %arg2: memref<1x16xf32, #tpu.memory_space<vmem>>, %arg3: memref<16x5xf32, #tpu.memory_space<vmem>>, %arg4: memref<1x5xf32, #tpu.memory_space<vmem>>, %arg5: memref<2x5xf32, #tpu.memory_space<vmem>>) attributes {dimension_semantics = [], scalar_prefetch = 0 : i64, scratch_operands = 0 : i64, tpu.core_type = #tpu.core_type<tc>} {
    %c0 = arith.constant 0 : index
    %c0_0 = arith.constant 0 : index
    %0 = vector.load %arg0[%c0, %c0_0] : memref<2x16xf32, #tpu.memory_space<vmem>>, vector<2x16xf32>
    %c0_1 = arith.constant 0 : index
    %c0_2 = arith.constant 0 : index
    %1 = vector.load %arg1[%c0_1, %c0_2] : memref<1x16xf32, #tpu.memory_space<vmem>>, vector<1x16xf32>
    %2 = vector.broadcast %1 : vector<1x16xf32> to vector<2x16xf32>
    %3 = arith.mulf %0, %2 : vector<2x16xf32>
    %c0_3 = arith.constant 0 : index
    %c0_4 = arith.constant 0 : index
    %4 = vector.load %arg2[%c0_3, %c0_4] : memref<1x16xf32, #tpu.memory_space<vmem>>, vector<1x16xf32>
    %5 = vector.broadcast %4 : vector<1x16xf32> to vector<2x16xf32>
    %6 = arith.addf %3, %5 : vector<2x16xf32>
    %c0_5 = arith.constant 0 : index
    %c0_6 = arith.constant 0 : index
    %7 = vector.load %arg3[%c0_5, %c0_6] : memref<16x5xf32, #tpu.memory_space<vmem>>, vector<16x5xf32>
    %cst = arith.constant dense<0.000000e+00> : vector<2x5xf32>
    %8 = tpu.matmul %6, %7, %cst {dimension_numbers = #tpu.dot_dimension_numbers<[1], [0], [0], [1], [0, 0, 1, 1], [], []>} : vector<2x16xf32>, vector<16x5xf32>, vector<2x5xf32> -> vector<2x5xf32>
    %c0_7 = arith.constant 0 : index
    %c0_8 = arith.constant 0 : index
    %9 = vector.load %arg4[%c0_7, %c0_8] : memref<1x5xf32, #tpu.memory_space<vmem>>, vector<1x5xf32>
    %10 = vector.broadcast %9 : vector<1x5xf32> to vector<2x5xf32>
    %11 = arith.addf %8, %10 : vector<2x5xf32>
    %c0_9 = arith.constant 0 : index
    %c0_10 = arith.constant 0 : index
    %12 = vector.load %arg5[%c0_9, %c0_10] : memref<2x5xf32, #tpu.memory_space<vmem>>, vector<2x5xf32>
    tpu.vector_store %arg5[%c0_9, %c0_10], %11 {strides = array<i32>} : memref<2x5xf32, #tpu.memory_space<vmem>>, vector<2x5xf32>,
    return
  }
}

</mosaic_0001>

<bundles_post_ra>
// kernel: temporal_conv_net.5
= control target key start
LH: loop header
LB: loop body
LE: loop exit
PB: predicated region body
PF: predicated region fallthrough
CT: control target
= control target key end

     0   :  { %s163_s0 = inlined_call_operand.vmem [shape: f32[2,16], index: 0, kind: input, shape index: {}]   ;;  %s164_s1 = inlined_call_operand.vmem [shape: f32[1,16], index: 1, kind: input, shape index: {}]   ;;  %s165_s2 = inlined_call_operand.vmem [shape: f32[1,16], index: 2, kind: input, shape index: {}]   ;;  %s166_s3 = inlined_call_operand.vmem [shape: f32[16,5], index: 3, kind: input, shape index: {}]   ;;  %s167_s4 = inlined_call_operand.vmem [shape: f32[1,5], index: 4, kind: input, shape index: {}]   ;;  %s168_s5 = inlined_call_operand.hbm [shape: f32[2,5], index: 5, kind: output, shape index: {}]  }
   0x1   :  { %v33_v0 = vld [vmem:[%s166_s3 + $0x8] sm:$0xff]  ;;  %v32_v1 = vld [vmem:[%s166_s3] sm:$0xff] }
   0x2   :  { %v21_v2 = vld [vmem:[%s163_s0] sm:$0x3]  ;;  %56 = vmatpush.msra.mxu0 %v33_v0 }
   0x3   :  { %v82_v3 = vld [vmem:[%s164_s1] ss:$0 sm:$0xff] }
   0x4   :  { %v83_v4 = vld [vmem:[%s165_s2] ss:$0 sm:$0xff]  ;;  %57 = vmatpush.msra.mxu0 %v32_v1  ;;  %v26_v5 = vmul.f32 %v82_v3, %v21_v2 }
   0x5   :  { %10 = vsyncpa [#allocation3], 0  ;;  %vm38_vm0 = vcmask 130048   ;;  %v84_v7 = vld [vmem:[%s167_s4] ss:$0 sm:$0xff]  ;;  %s111_s0 = smov [#allocation2]  }
   0x6   :  { %v31_v6 = vadd.f32 %v83_v4, %v26_v5  ;;  %s69_s29 = sshll.u32 %s111_s0, 4  ;;  %s71_s1 = sshll.u32 %s168_s5, 4  ;;  %vm62_vm1 = vcmask 33792   ;;  %s70_s29 = int_to_ptr.vmem [resolvable:$true] %s69_s29  ;;  %s72_s1 = int_to_ptr.hbm [resolvable:$true] %s71_s1 }
   0x8   :  { %80 = vmatmul.msk.f32.vlgmr.msra.gmra.mxu0 %vm38_vm0, %v31_v6 }
  0x85   :  { %v59_v8 = vpop.f32.mrf.mxu0 }
  0x86   :  { %v60_v9 = vadd.f32 %v84_v7, %v59_v8 }
  0x88   :  { %63 = vst.msk [vmem:[#allocation2] sm:$0x3] %vm62_vm1, %v60_v9 }
  0x89   :  { %74 = dma.vmem_to_hbm [thread:$0]  %s70_s29, 32, %s72_s1, [#allocation3]  }
  0x8a   :  { %109 = dma.done.wait [#allocation3], 32  }
  0x8b   :  { %110 = vsyncadd [#allocation3], 4294967264 }
  0x8c   :  { %79 = vsyncpa [#allocation3], 1 }

// kernel: temporal_conv_net.3
= control target key start
LH: loop header
LB: loop body
LE: loop exit
PB: predicated region body
PF: predicated region fallthrough
CT: control target
= control target key end

     0   :  { %s685_s24 = smov 0   ;;  %s755_s0 = inlined_call_operand.vmem [shape: f32[2,16,4], index: 0, kind: input, shape index: {}]   ;;  %s756_s1 = inlined_call_operand.vmem [shape: f32[1,4], index: 1, kind: input, shape index: {}]   ;;  %s757_s2 = inlined_call_operand.vmem [shape: f32[1,4], index: 2, kind: input, shape index: {}]   ;;  %s758_s3 = inlined_call_operand.vmem [shape: f32[3,4,8], index: 3, kind: input, shape index: {}]   ;;  %s759_s4 = inlined_call_operand.vmem [shape: f32[1,8], index: 4, kind: input, shape index: {}]   ;;  %s760_s5 = inlined_call_operand.vmem [shape: f32[2,18,8], index: 5, kind: output, shape index: {0}]   ;;  %s761_s6 = inlined_call_operand.vmem [shape: f32[2,1,8], index: 6, kind: output, shape index: {1}]   ;;  %s762_s7 = inlined_call_operand.vmem [shape: f32[2,1,8], index: 7, kind: output, shape index: {2}]  }
   0x1 LB: > { %s597_s25 = sadd.s32 4294967295, %s642_s24   ;;  %p601_p0 = scmp.ge.s32.totalorder %s642_s24, 1  ;;  %s642_s24 = sphi %s685_s24, %s18_s24  }
   0x2   : > { %p242_p1 = scmp.lt.s32.totalorder %s642_s24, 3 }
   0x4   : > { %p243_p2 = pnand %p601_p0, %p242_p1 }
   0x5   : > { %p280_p3 = scmp.lt.s32.totalorder (!%p243_p2), %s597_s25, 1 }
   0x6   : > { %246 = sbr.rel (%p243_p2) target bundleno = 200 (0xc8), region = 40 }
   0xb   : > { %vm335_vm0 = vcmask 1043456   ;;  %v614_v0 = vld [vmem:[%s758_s3 + $0x8] sm:$0xf]  ;;  %v633_v1 = vld [vmem:[%s756_s1] ss:$0 sm:$0xff]  ;;  %s764_s25 = smov (!%p280_p3, %s597_s25), 1 }
   0xc   : > { %615 = vmatpush.msk.msra.mxu2 %vm335_vm0, %v614_v0  ;;  %vm310_vm1 = vcmask 31744   ;;  %v605_v2 = vld [vmem:[%s758_s3 + $0x4] sm:$0xf]  ;;  %vm313_vm2 = vcmask 27648   ;;  %v644_v3 = vmov 0.0   ;;  %s621_s11 = sshll.u32 %s764_s25, 4  ;;  %s292_s27 = scalar_lea.vmem %s761_s6, %s764_s25 }
   0xd   : > { %311 = vst.msk [vmem:[#allocation2] sm:$0xff] %vm310_vm1, %v644_v3  ;;  %606 = vmatpush.msk.msra.mxu0 %vm335_vm0, %v605_v2  ;;  %v320_v4 = vld [vmem:[%s758_s3] sm:$0xf]  ;;  %622 = vmatpush.msk.msra.mxu3 %vm335_vm0, %v605_v2  ;;  %s284_s14 = scalar_lea.vmem %s755_s0, %s621_s11  ;;  %s623_s19 = smul.u32 24, %s764_s25  ;;  %vm459_vm3 = vcmask 64512   ;;  %vm462_vm4 = vcmask 58368  }
   0xe   : > { %312 = vst.msk [vmem:[#allocation2 + $0x8] sm:$0xff] %vm310_vm1, %v644_v3  ;;  %610 = vmatpush.msk.msra.mxu1 %vm335_vm0, %v320_v4  ;;  %v634_v5 = vld [vmem:[%s757_s2] ss:$0 sm:$0xff]  ;;  %v297_v7 = vld [vmem:[%s284_s14 + $0x8] sm:$0xff]  ;;  %vm475_vm5 = vcmask 57344   ;;  %s295_s30 = scalar_lea.vmem %s762_s7, %s764_s25 }
   0xf   : > { %314 = vst.msk [vmem:[#allocation2 + $0x10] sm:$0xf] %vm313_vm2, %v644_v3  ;;  %v296_v6 = vld [vmem:[%s284_s14] sm:$0xff]  ;;  %v303_v9 = vmul.f32 %v633_v1, %v297_v7  ;;  %s289_s22 = scalar_lea.vmem %s760_s5, %s623_s19 }
  0x10   : > { %v302_v8 = vmul.f32 %v633_v1, %v296_v6  ;;  %v635_v24 = vld [vmem:[%s759_s4] ss:$0 sm:$0xff] }
  0x11   : > { %v309_v11 = vadd.f32 %v634_v5, %v303_v9 }
  0x12   : > { %v308_v10 = vadd.f32 %v634_v5, %v302_v8 }
  0x13   : > { %316 = vst.msk [vmem:[#allocation2 + $0xa] sm:$0xff] %vm310_vm1, %v309_v11 }
  0x14   : > { %315 = vst.msk [vmem:[#allocation2 + $0x2] sm:$0xff] %vm310_vm1, %v308_v10 }
  0x16   : > { %v405_v19 = vld [vmem:[#allocation2 + $0x12] sm:$0x3] }
  0x1a   : > { %v404_v16 = vld [vmem:[#allocation2 + $0xa] sm:$0xff] }
  0x1b   : > { %v403_v12 = vld [vmem:[#allocation2 + $0x2] sm:$0xff]  ;;  %v323_v18 = vld [vmem:[#allocation2 + $0x11] sm:$0x3] }
  0x1c   : > { %v321_v13 = vld [vmem:[#allocation2 + $0x1] sm:$0xff]  ;;  %616 = vmatmul.msk.f32.vlgmr.msra.gmra.mxu2 %vm310_vm1, %v403_v12  ;;  %v322_v15 = vld [vmem:[#allocation2 + $0x9] sm:$0xff] }
  0x1d   : > { %v317_v14 = vld [vmem:[#allocation2] sm:$0xff]  ;;  %607 = vmatmul.msk.f32.vlgmr.msra.gmra.mxu0 %vm310_vm1, %v321_v13  ;;  %608 = vmatmul.msk.f32.vlgmr.msra.gmra.mxu3 %vm310_vm1, %v322_v15  ;;  %v318_v17 = vld [vmem:[#allocation2 + $0x8] sm:$0xff]  ;;  %v319_v20 = vld [vmem:[#allocation2 + $0x10] sm:$0x3] }
  0x1e   : > { %611 = vmatmul.msk.f32.vlgmr.msra.gmra.mxu1 %vm310_vm1, %v317_v14 }
  0x24   : > { %617 = vmatmul.msk.f32.gmra.mxu2 %vm310_vm1, %v404_v16 }
  0x25   : > { %609 = vmatmul.msk.f32.gmra.mxu3 %vm310_vm1, %v323_v18 }
  0x26   : > { %612 = vmatmul.msk.f32.gmra.mxu1 %vm310_vm1, %v318_v17 }
  0x2c   : > { %618 = vmatmul.msk.f32.gmra.mxu2 %vm310_vm1, %v405_v19 }
  0x2e   : > { %613 = vmatmul.msk.f32.gmra.mxu1 %vm310_vm1, %v319_v20 }
  0x9a   : > { %v356_v21 = vpop.f32.mrf.mxu0 }
  0x9b   : > { %v394_v22 = vpop.f32.mrf.mxu1 }
  0x9c   : > { %v395_v23 = vadd.f32 %v394_v22, %v356_v21 }
  0x9f   : > { %v437_v25 = vpop.f32.mrf.mxu2 }
  0xa0   : > { %v446_v26 = vadd.f32 %v437_v25, %v395_v23  ;;  %v359_v27 = vpop.f32.mrf.mxu3 }
  0xa2   : > { %v453_v28 = vadd.f32 %v635_v24, %v446_v26 }
  0xa3   : > { %v397_v29 = vpop.f32.mrf.mxu1 }
  0xa4   : > { %v456_v30 = vmax.f32 %v453_v28, 0.0  ;;  %v398_v31 = vadd.f32 %v397_v29, %v359_v27 }
  0xa6   : > { %460 = vst.msk [vmem:[%s289_s22] sm:$0xff] %vm459_vm3, %v456_v30  ;;  %v477_v42 = vmul.f32 %v456_v30, %v456_v30  ;;  %v464_v45 = vsel %vm459_vm3, %v456_v30, 0.0 }
  0xa7   : > { %v440_v32 = vpop.f32.mrf.mxu2 }
  0xa8   : > { %v447_v33 = vadd.f32 %v440_v32, %v398_v31  ;;  %v362_v34 = vpop.f32.mrf.mxu3  ;;  %v480_v49 = vsel %vm459_vm3, %v477_v42, 0.0 }
  0xaa   : > { %v454_v35 = vadd.f32 %v635_v24, %v447_v33 }
  0xab   : > { %v400_v36 = vpop.f32.mrf.mxu1 }
  0xac   : > { %v457_v37 = vmax.f32 %v454_v35, 0.0  ;;  %v401_v38 = vadd.f32 %v400_v36, %v362_v34 }
  0xae   : > { %461 = vst.msk [vmem:[%s289_s22 + $0x8] sm:$0xff] %vm459_vm3, %v457_v37  ;;  %v478_v40 = vmul.f32 %v457_v37, %v457_v37  ;;  %v465_v43 = vsel %vm459_vm3, %v457_v37, 0.0 }
  0xaf   : > { %v443_v39 = vpop.f32.mrf.mxu2  ;;  %v466_v48 = vadd.f32 %v465_v43, %v464_v45 }
  0xb0   : > { %v448_v41 = vadd.f32 %v443_v39, %v401_v38  ;;  %v481_v46 = vsel %vm459_vm3, %v478_v40, 0.0 }
  0xb1   : > { %v482_v52 = vadd.f32 %v481_v46, %v480_v49 }
  0xb2   : > { %v455_v44 = vadd.f32 %v635_v24, %v448_v41 }
  0xb4   : > { %v458_v47 = vmax.f32 %v455_v44, 0.0 }
  0xb6   : > { %463 = vst.msk [vmem:[%s289_s22 + $0x10] sm:$0x3] %vm462_vm4, %v458_v47  ;;  %v467_v50 = vsel %vm462_vm4, %v458_v47, 0.0  ;;  %v479_v51 = vmul.f32 %v458_v47, %v458_v47 }
  0xb7   : > { %v468_v53 = vadd.f32 %v467_v50, %v466_v48 }
  0xb8   : > { %v483_v54 = vsel %vm462_vm4, %v479_v51, 0.0 }
  0xb9   : > { %v469_v55 = vrot.slane %v468_v53, 4  ;;  %v484_v56 = vadd.f32 %v483_v54, %v482_v52 }
  0xbb   : > { %v470_v57 = vadd.f32 %v469_v55, %v468_v53  ;;  %v485_v58 = vrot.slane %v484_v56, 4 }
  0xbd   : > { %v471_v59 = vrot.slane %v470_v57, 2  ;;  %v486_v60 = vadd.f32 %v485_v58, %v484_v56 }
  0xbf   : > { %v472_v61 = vadd.f32 %v471_v59, %v470_v57  ;;  %v487_v62 = vrot.slane %v486_v60, 2 }
  0xc1   : > { %v473_v63 = vrot.slane %v472_v61, 1  ;;  %v488_v0 = vadd.f32 %v487_v62, %v486_v60 }
  0xc3   : > { %v474_v1 = vadd.f32 %v473_v63, %v472_v61  ;;  %v489_v2 = vrot.slane %v488_v0, 1 }
  0xc5   : > { %476 = vst.msk [vmem:[%s292_s27] sm:$0x1] %vm475_vm5, %v474_v1  ;;  %v490_v3 = vadd.f32 %v489_v2, %v488_v0 }
  0xc7   : > { %491 = vst.msk [vmem:[%s295_s30] sm:$0x1] %vm475_vm5, %v490_v3 }
  0xc8 PF: > { %s18_s24 = sadd.s32 1, %s642_s24  }
  0xc9   : > { %p15_p4 = scmp.ge.s32.totalorder %s18_s24, 4  }
  0xcb   :  { %17 = sbr.rel (!%p15_p4) target bundleno = 1 (0x1), region = 96 }

// kernel: temporal_conv_net.4
= control target key start
LH: loop header
LB: loop body
LE: loop exit
PB: predicated region body
PF: predicated region fallthrough
CT: control target
= control target key end

     0   :  { %s675_s24 = smov 0   ;;  %s745_s0 = inlined_call_operand.vmem [shape: f32[2,18,8], index: 0, kind: input, shape index: {}]   ;;  %s746_s1 = inlined_call_operand.vmem [shape: f32[1,8], index: 1, kind: input, shape index: {}]   ;;  %s747_s2 = inlined_call_operand.vmem [shape: f32[1,8], index: 2, kind: input, shape index: {}]   ;;  %s748_s3 = inlined_call_operand.vmem [shape: f32[3,8,16], index: 3, kind: input, shape index: {}]   ;;  %s749_s4 = inlined_call_operand.vmem [shape: f32[1,16], index: 4, kind: input, shape index: {}]   ;;  %s750_s5 = inlined_call_operand.vmem [shape: f32[2,22,16], index: 5, kind: output, shape index: {0}]   ;;  %s751_s6 = inlined_call_operand.vmem [shape: f32[2,1,16], index: 6, kind: output, shape index: {1}]   ;;  %s752_s7 = inlined_call_operand.vmem [shape: f32[2,1,16], index: 7, kind: output, shape index: {2}]  }
   0x1 LB: > { %s592_s25 = sadd.s32 4294967295, %s632_s24   ;;  %p596_p0 = scmp.ge.s32.totalorder %s632_s24, 1  ;;  %s632_s24 = sphi %s675_s24, %s18_s24  }
   0x2   : > { %p242_p1 = scmp.lt.s32.totalorder %s632_s24, 3 }
   0x4   : > { %p243_p2 = pnand %p596_p0, %p242_p1 }
   0x5   : > { %p280_p3 = scmp.lt.s32.totalorder (!%p243_p2), %s592_s25, 1 }
   0x6   : > { %246 = sbr.rel (%p243_p2) target bundleno = 200 (0xc8), region = 40 }
   0xb   : > { %v606_v0 = vld [vmem:[%s748_s3 + $0x10] sm:$0xff]  ;;  %vm313_vm0 = vcmask 64512   ;;  %s754_s25 = smov (!%p280_p3, %s592_s25), 1  ;;  %v634_v1 = vmov 0.0   ;;  %v599_v2 = vld [vmem:[%s748_s3 + $0x8] sm:$0xff]  ;;  %v325_v3 = vld [vmem:[%s748_s3] sm:$0xff] }
   0xc   : > { %430 = vmatpush.msra.mxu2 %v606_v0  ;;  %314 = vst.msk [vmem:[#allocation2] sm:$0xff] %vm313_vm0, %v634_v1  ;;  %355 = vmatpush.msra.mxu0 %v599_v2  ;;  %s613_s9 = smul.u32 24, %s754_s25  ;;  %v623_v4 = vld [vmem:[%s746_s1] ss:$0 sm:$0xff]  ;;  %vm317_vm1 = vcmask 58368   ;;  %vm454_vm2 = vcmask 130048   ;;  %s292_s26 = scalar_lea.vmem %s751_s6, %s754_s25 }
   0xd   : > { %315 = vst.msk [vmem:[#allocation2 + $0x8] sm:$0xff] %vm313_vm0, %v634_v1  ;;  %390 = vmatpush.msra.mxu1 %v325_v3  ;;  %612 = vmatpush.msra.mxu3 %v599_v2  ;;  %v624_v5 = vld [vmem:[%s747_s2] ss:$0 sm:$0xff]  ;;  %vm457_vm3 = vcmask 128000   ;;  %vm470_vm4 = vcmask 122880   ;;  %s295_s29 = scalar_lea.vmem %s752_s7, %s754_s25 }
   0xe   : > { %316 = vst.msk [vmem:[#allocation2 + $0x10] sm:$0xff] %vm313_vm0, %v634_v1  ;;  %s284_s14 = scalar_lea.vmem %s745_s0, %s613_s9  ;;  %v625_v27 = vld [vmem:[%s749_s4] ss:$0 sm:$0xff]  ;;  %s289_s21 = scalar_lea.vmem %s750_s5, %s613_s9 }
   0xf   : > { %318 = vst.msk [vmem:[#allocation2 + $0x18] sm:$0x3] %vm317_vm1, %v634_v1  ;;  %v296_v6 = vld [vmem:[%s284_s14] sm:$0xff]  ;;  %v297_v7 = vld [vmem:[%s284_s14 + $0x8] sm:$0xff]  ;;  %v298_v8 = vld [vmem:[%s284_s14 + $0x10] sm:$0x3] }
  0x10   : > { %v303_v9 = vmul.f32 %v623_v4, %v296_v6  ;;  %v304_v10 = vmul.f32 %v623_v4, %v297_v7  ;;  %v305_v11 = vmul.f32 %v623_v4, %v298_v8 }
  0x12   : > { %v310_v12 = vadd.f32 %v624_v5, %v303_v9  ;;  %v311_v13 = vadd.f32 %v624_v5, %v304_v10  ;;  %v312_v14 = vadd.f32 %v624_v5, %v305_v11 }
  0x14   : > { %319 = vst.msk [vmem:[#allocation2 + $0x4] sm:$0xff] %vm313_vm0, %v310_v12 }
  0x15   : > { %320 = vst.msk [vmem:[#allocation2 + $0xc] sm:$0xff] %vm313_vm0, %v311_v13 }
  0x16   : > { %321 = vst.msk [vmem:[#allocation2 + $0x14] sm:$0x3] %vm317_vm1, %v312_v14 }
  0x1b   : > { %v401_v15 = vld [vmem:[#allocation2 + $0x4] sm:$0xff] }
  0x1c   : > { %v326_v16 = vld [vmem:[#allocation2 + $0x2] sm:$0xff]  ;;  %607 = vmatmul.msk.f32.vlgmr.msra.gmra.mxu2 %vm313_vm0, %v401_v15  ;;  %v327_v18 = vld [vmem:[#allocation2 + $0xa] sm:$0xff] }
  0x1d   : > { %v322_v17 = vld [vmem:[#allocation2] sm:$0xff]  ;;  %600 = vmatmul.msk.f32.vlgmr.msra.gmra.mxu0 %vm313_vm0, %v326_v16  ;;  %601 = vmatmul.msk.f32.vlgmr.msra.gmra.mxu3 %vm313_vm0, %v327_v18  ;;  %v402_v19 = vld [vmem:[#allocation2 + $0xc] sm:$0xff]  ;;  %v403_v22 = vld [vmem:[#allocation2 + $0x14] sm:$0x3f] }
  0x1e   : > { %603 = vmatmul.msk.f32.vlgmr.msra.gmra.mxu1 %vm313_vm0, %v322_v17  ;;  %v323_v20 = vld [vmem:[#allocation2 + $0x8] sm:$0xff]  ;;  %v328_v21 = vld [vmem:[#allocation2 + $0x12] sm:$0x3f] }
  0x1f   : > { %v324_v23 = vld [vmem:[#allocation2 + $0x10] sm:$0x3f] }
  0x24   : > { %608 = vmatmul.msk.f32.gmra.mxu2 %vm313_vm0, %v402_v19 }
  0x25   : > { %602 = vmatmul.msk.f32.gmra.mxu3 %vm313_vm0, %v328_v21 }
  0x26   : > { %604 = vmatmul.msk.f32.gmra.mxu1 %vm313_vm0, %v323_v20 }
  0x2c   : > { %609 = vmatmul.msk.f32.gmra.mxu2 %vm313_vm0, %v403_v22 }
  0x2e   : > { %605 = vmatmul.msk.f32.gmra.mxu1 %vm313_vm0, %v324_v23 }
  0x9a   : > { %v357_v24 = vpop.f32.mrf.mxu0 }
  0x9b   : > { %v392_v25 = vpop.f32.mrf.mxu1 }
  0x9c   : > { %v393_v26 = vadd.f32 %v392_v25, %v357_v24 }
  0x9f   : > { %v432_v28 = vpop.f32.mrf.mxu2 }
  0xa0   : > { %v441_v29 = vadd.f32 %v432_v28, %v393_v26  ;;  %v360_v30 = vpop.f32.mrf.mxu3 }
  0xa2   : > { %v448_v31 = vadd.f32 %v625_v27, %v441_v29 }
  0xa3   : > { %v395_v32 = vpop.f32.mrf.mxu1 }
  0xa4   : > { %v451_v33 = vmax.f32 %v448_v31, 0.0  ;;  %v396_v34 = vadd.f32 %v395_v32, %v360_v30 }
  0xa6   : > { %455 = vst.msk [vmem:[%s289_s21] sm:$0xff] %vm454_vm2, %v451_v33  ;;  %v472_v45 = vmul.f32 %v451_v33, %v451_v33  ;;  %v459_v48 = vsel %vm454_vm2, %v451_v33, 0.0 }
  0xa7   : > { %v435_v35 = vpop.f32.mrf.mxu2 }
  0xa8   : > { %v442_v36 = vadd.f32 %v435_v35, %v396_v34  ;;  %v363_v37 = vpop.f32.mrf.mxu3  ;;  %v475_v52 = vsel %vm454_vm2, %v472_v45, 0.0 }
  0xaa   : > { %v449_v38 = vadd.f32 %v625_v27, %v442_v36 }
  0xab   : > { %v398_v39 = vpop.f32.mrf.mxu1 }
  0xac   : > { %v452_v40 = vmax.f32 %v449_v38, 0.0  ;;  %v399_v41 = vadd.f32 %v398_v39, %v363_v37 }
  0xae   : > { %456 = vst.msk [vmem:[%s289_s21 + $0x8] sm:$0xff] %vm454_vm2, %v452_v40  ;;  %v473_v43 = vmul.f32 %v452_v40, %v452_v40  ;;  %v460_v46 = vsel %vm454_vm2, %v452_v40, 0.0 }
  0xaf   : > { %v438_v42 = vpop.f32.mrf.mxu2  ;;  %v461_v51 = vadd.f32 %v460_v46, %v459_v48 }
  0xb0   : > { %v443_v44 = vadd.f32 %v438_v42, %v399_v41  ;;  %v476_v49 = vsel %vm454_vm2, %v473_v43, 0.0 }
  0xb1   : > { %v477_v55 = vadd.f32 %v476_v49, %v475_v52 }
  0xb2   : > { %v450_v47 = vadd.f32 %v625_v27, %v443_v44 }
  0xb4   : > { %v453_v50 = vmax.f32 %v450_v47, 0.0 }
  0xb6   : > { %458 = vst.msk [vmem:[%s289_s21 + $0x10] sm:$0x3f] %vm457_vm3, %v453_v50  ;;  %v462_v53 = vsel %vm457_vm3, %v453_v50, 0.0  ;;  %v474_v54 = vmul.f32 %v453_v50, %v453_v50 }
  0xb7   : > { %v463_v56 = vadd.f32 %v462_v53, %v461_v51 }
  0xb8   : > { %v478_v57 = vsel %vm457_vm3, %v474_v54, 0.0 }
  0xb9   : > { %v464_v58 = vrot.slane %v463_v56, 4  ;;  %v479_v59 = vadd.f32 %v478_v57, %v477_v55 }
  0xbb   : > { %v465_v60 = vadd.f32 %v464_v58, %v463_v56  ;;  %v480_v61 = vrot.slane %v479_v59, 4 }
  0xbd   : > { %v466_v62 = vrot.slane %v465_v60, 2  ;;  %v481_v63 = vadd.f32 %v480_v61, %v479_v59 }
  0xbf   : > { %v467_v0 = vadd.f32 %v466_v62, %v465_v60  ;;  %v482_v1 = vrot.slane %v481_v63, 2 }
  0xc1   : > { %v468_v2 = vrot.slane %v467_v0, 1  ;;  %v483_v3 = vadd.f32 %v482_v1, %v481_v63 }
  0xc3   : > { %v469_v4 = vadd.f32 %v468_v2, %v467_v0  ;;  %v484_v5 = vrot.slane %v483_v3, 1 }
  0xc5   : > { %471 = vst.msk [vmem:[%s292_s26] sm:$0x1] %vm470_vm4, %v469_v4  ;;  %v485_v6 = vadd.f32 %v484_v5, %v483_v3 }
  0xc7   : > { %486 = vst.msk [vmem:[%s295_s29] sm:$0x1] %vm470_vm4, %v485_v6 }
  0xc8 PF: > { %s18_s24 = sadd.s32 1, %s632_s24  }
  0xc9   : > { %p15_p4 = scmp.ge.s32.totalorder %s18_s24, 4  }
  0xcb   :  { %17 = sbr.rel (!%p15_p4) target bundleno = 1 (0x1), region = 96 }

</bundles_post_ra>
